<compile_context>
chip_gen: v7x
topology: tpu7x:2x2x1
jax: 0.10.0
libtpu: 0.0.40
codegen_flags: <defaults>
</compile_context>

<pallas_src>
import functools

import jax
import jax.numpy as jnp
from jax.experimental import pallas as pl
from jax.experimental.pallas import tpu as pltpu

NEG_SLOPE = 0.1          # nn.LeakyReLU(0.1) everywhere in darknet
BN_EPS = 1e-5

BLOCKS = (1, 2, 8, 8, 4)                    # darknet53 residual-block counts
CHANNELS = (64, 128, 256, 512, 1024)        # == self.num_features


# ----------------------------------------------------------------------------- kernels
def _fused_kernel(p_ref, w_ref, s_ref, b_ref, o_ref):
    """Single full-K step: dot -> BN -> LeakyReLU -> bf16 store."""
    y = jnp.dot(p_ref[...], w_ref[...], preferred_element_type=jnp.float32)
    y = y * s_ref[...] + b_ref[...]
    o_ref[...] = jnp.where(y > 0, y, NEG_SLOPE * y).astype(o_ref.dtype)


def _fused_res_kernel(p_ref, w_ref, s_ref, b_ref, r_ref, o_ref):
    y = jnp.dot(p_ref[...], w_ref[...], preferred_element_type=jnp.float32)
    y = y * s_ref[...] + b_ref[...]
    y = jnp.where(y > 0, y, NEG_SLOPE * y) + r_ref[...].astype(jnp.float32)
    o_ref[...] = y.astype(o_ref.dtype)


def _fused_kernel_multik(p_ref, w_ref, s_ref, b_ref, o_ref, acc_ref):
    """K-tiled: fp32 VMEM accumulator, direct store on first K step, bf16 output."""
    k = pl.program_id(2)
    prod = jnp.dot(p_ref[...], w_ref[...], preferred_element_type=jnp.float32)

    @pl.when(k == 0)
    def _():
        acc_ref[...] = prod

    @pl.when(k > 0)
    def _():
        acc_ref[...] += prod

    @pl.when(k == pl.num_programs(2) - 1)
    def _():
        y = acc_ref[...] * s_ref[...] + b_ref[...]
        o_ref[...] = jnp.where(y > 0, y, NEG_SLOPE * y).astype(o_ref.dtype)


def _fused_res_kernel_multik(p_ref, w_ref, s_ref, b_ref, r_ref, o_ref, acc_ref):
    k = pl.program_id(2)
    prod = jnp.dot(p_ref[...], w_ref[...], preferred_element_type=jnp.float32)

    @pl.when(k == 0)
    def _():
        acc_ref[...] = prod

    @pl.when(k > 0)
    def _():
        acc_ref[...] += prod

    @pl.when(k == pl.num_programs(2) - 1)
    def _():
        y = acc_ref[...] * s_ref[...] + b_ref[...]
        y = jnp.where(y > 0, y, NEG_SLOPE * y) + r_ref[...].astype(jnp.float32)
        o_ref[...] = y.astype(o_ref.dtype)


# ----------------------------------------------------------------------------- tiling helpers
def _round_up(x, m):
    return (x + m - 1) // m * m


def _choose_tcout(coutp):
    for t in (512, 256, 128):
        if coutp % t == 0:
            return t
    return 128


def _choose_tk(kp, tcout):
    """Largest 128-multiple divisor of kp whose bf16 weight tile stays <= ~2 MiB (cap 2048)."""
    budget = 2 * 1024 * 1024
    max_tk = min(2048, max(128, (budget // (tcout * 2)) // 128 * 128))
    tk = 128
    mult = 1
    while 128 * mult <= min(max_tk, kp):
        cand = 128 * mult
        if kp % cand == 0:
            tk = cand
        mult += 1
    return tk


def _choose_tm(m):
    """bf16-friendly (>=16 rows) M tile that keeps padded rows within ~20% of M."""
    mp16 = _round_up(max(m, 1), 16)
    for tm in (256, 128, 64, 32, 16):
        if tm > mp16:
            continue
        mp = _round_up(mp16, tm)
        if mp <= mp16 * 1.2 + 15:
            return tm, mp
    return 16, mp16


def _fused_matmul(patches, w_mat, scale, bias, residual=None):
    """patches: (M,K) bf16; w_mat: (Kp,Coutp) bf16 (prepadded at init);
       scale/bias: (1,Coutp) fp32.  Returns (Mp,Coutp) bf16."""
    M, K = patches.shape
    Kp, Coutp = w_mat.shape
    tcout = _choose_tcout(Coutp)
    tk = _choose_tk(Kp, tcout)
    tm, Mp = _choose_tm(M)
    nm, nc, nk = Mp // tm, Coutp // tcout, Kp // tk

    p = patches
    if Mp != M or Kp != K:
        p = jnp.pad(p, ((0, Mp - M), (0, Kp - K)))

    r = None
    if residual is not None:
        r = residual
        rM, rC = r.shape
        if rM != Mp or rC != Coutp:
            r = jnp.pad(r, ((0, Mp - rM), (0, Coutp - rC)))

    if nk == 1:
        in_specs = [
            pl.BlockSpec((tm, Kp), lambda i, j: (i, 0)),        # patches (full K)
            pl.BlockSpec((Kp, tcout), lambda i, j: (0, j)),     # weights (full K)
            pl.BlockSpec((1, tcout), lambda i, j: (0, j)),      # BN scale
            pl.BlockSpec((1, tcout), lambda i, j: (0, j)),      # BN bias
        ]
        args = [p, w_mat, scale, bias]
        kernel = _fused_kernel
        if r is not None:
            in_specs.append(pl.BlockSpec((tm, tcout), lambda i, j: (i, j)))
            args.append(r)
            kernel = _fused_res_kernel
        return pl.pallas_call(
            kernel,
            out_shape=jax.ShapeDtypeStruct((Mp, Coutp), jnp.bfloat16),
            grid_spec=pltpu.PrefetchScalarGridSpec(
                num_scalar_prefetch=0,
                grid=(nm, nc),
                in_specs=in_specs,
                out_specs=pl.BlockSpec((tm, tcout), lambda i, j: (i, j)),
            ),
            compiler_params=pltpu.CompilerParams(
                dimension_semantics=("parallel", "parallel"),
            ),
        )(*args)

    # K-tiled path (only the largest-K layers land here)
    in_specs = [
        pl.BlockSpec((tm, tk), lambda i, j, k: (i, k)),
        pl.BlockSpec((tk, tcout), lambda i, j, k: (k, j)),
        pl.BlockSpec((1, tcout), lambda i, j, k: (0, j)),
        pl.BlockSpec((1, tcout), lambda i, j, k: (0, j)),
    ]
    args = [p, w_mat, scale, bias]
    kernel = _fused_kernel_multik
    if r is not None:
        in_specs.append(pl.BlockSpec((tm, tcout), lambda i, j, k: (i, j)))
        args.append(r)
        kernel = _fused_res_kernel_multik
    return pl.pallas_call(
        kernel,
        out_shape=jax.ShapeDtypeStruct((Mp, Coutp), jnp.bfloat16),
        grid_spec=pltpu.PrefetchScalarGridSpec(
            num_scalar_prefetch=0,
            grid=(nm, nc, nk),
            in_specs=in_specs,
            out_specs=pl.BlockSpec((tm, tcout), lambda i, j, k: (i, j)),
            scratch_shapes=[pltpu.VMEM((tm, tcout), jnp.float32)],
        ),
        compiler_params=pltpu.CompilerParams(
            dimension_semantics=("parallel", "parallel", "arbitrary"),
        ),
    )(*args)


def _im2col(x, kh, kw, stride, dilation, padding):
    # x: (N, H, W, C) bf16 -> (N*Ho*Wo, kh*kw*C)  (tap-major, channel-minor ordering)
    N, H, W, C = x.shape
    Ho = (H + 2 * padding - dilation * (kh - 1) - 1) // stride + 1
    Wo = (W + 2 * padding - dilation * (kw - 1) - 1) // stride + 1
    xp = jnp.pad(x, ((0, 0), (padding, padding), (padding, padding), (0, 0)))
    cols = []
    for ih in range(kh):
        for iw in range(kw):
            h0 = ih * dilation
            w0 = iw * dilation
            sl = xp[:, h0:h0 + (Ho - 1) * stride + 1:stride,
                       w0:w0 + (Wo - 1) * stride + 1:stride, :]
            cols.append(sl)
    patches = jnp.concatenate(cols, axis=-1)
    return patches.reshape(N * Ho * Wo, kh * kw * C), (N, Ho, Wo)


@functools.partial(jax.jit,
                   static_argnames=("kh", "kw", "stride", "dilation", "padding", "cout"))
def _conv_impl(x, w_mat, scale, bias, residual, *, kh, kw, stride, dilation, padding, cout):
    N, H, W, _ = x.shape
    if kh == 1 and kw == 1 and stride == 1 and padding == 0:
        Ho, Wo = H, W
        patches = x.reshape(N * H * W, x.shape[-1])          # 1x1 conv: pure reshape
    else:
        patches, (N, Ho, Wo) = _im2col(x, kh, kw, stride, dilation, padding)
    M = N * Ho * Wo
    res2 = None if residual is None else residual.reshape(M, residual.shape[-1])
    out = _fused_matmul(patches, w_mat, scale, bias, res2)
    return out[:M, :cout].reshape(N, Ho, Wo, cout)


def conv_bn_lrelu(x, cp, residual=None, *, stride, dilation, padding):
    return _conv_impl(x, cp["w_mat"], cp["scale"], cp["bias"], residual,
                      kh=cp["kh"], kw=cp["kw"], stride=stride, dilation=dilation,
                      padding=padding, cout=cp["cout"])


# ----------------------------------------------------------------------------- parameters
def _conv_params(key, cout, cin, k):
    kw_, kg, kb, km, kv = jax.random.split(key, 5)
    w = jax.random.normal(kw_, (cout, cin, k, k), jnp.float32) / jnp.sqrt(float(cin * k * k))
    gamma = 1.0 + 0.1 * jax.random.normal(kg, (cout,), jnp.float32)
    beta = 0.1 * jax.random.normal(kb, (cout,), jnp.float32)
    mean = 0.1 * jax.random.normal(km, (cout,), jnp.float32)
    var = jnp.abs(jax.random.normal(kv, (cout,), jnp.float32)) + 0.5
    scale = gamma / jnp.sqrt(var + BN_EPS)        # fold eval-mode BatchNorm
    bias = beta - mean * scale

    # Hoisted weight repacking: (Cout,Cin,KH,KW) -> (Kp,Coutp) bf16, done once at init.
    K = k * k * cin
    Kp = _round_up(K, 128)
    Coutp = _round_up(cout, 128)
    w_mat = jnp.transpose(w, (2, 3, 1, 0)).reshape(K, cout)
    w_mat = jnp.pad(w_mat, ((0, Kp - K), (0, Coutp - cout))).astype(jnp.bfloat16)
    scale_p = jnp.pad(scale, (0, Coutp - cout)).reshape(1, Coutp).astype(jnp.float32)
    bias_p = jnp.pad(bias, (0, Coutp - cout)).reshape(1, Coutp).astype(jnp.float32)

    return {
        # packed (used by the Pallas forward)
        "w_mat": w_mat, "scale": scale_p, "bias": bias_p,
        "kh": k, "kw": k, "cin": cin, "cout": cout,
        # raw (kept only for the lax.conv reference check)
        "w": w, "scale_raw": scale, "bias_raw": bias,
    }


def init_params(key):
    params = {}
    key, k0 = jax.random.split(key)
    params["conv1"] = _conv_params(k0, 32, 3, 3)          # conv1 / bn1 / relu1 stem
    in_c = 32
    for li, (c, nb) in enumerate(zip(CHANNELS, BLOCKS), start=1):
        key, kd = jax.random.split(key)
        layer = {"down": _conv_params(kd, c, in_c, 3), "blocks": []}
        for _ in range(nb):                               # darknet BasicBlock: 1x1 -> 3x3 + res
            key, k1, k2 = jax.random.split(key, 3)
            layer["blocks"].append({
                "conv1": _conv_params(k1, c // 2, c, 1),
                "conv2": _conv_params(k2, c, c // 2, 3),
            })
        params[f"layer{li}"] = layer
        in_c = c
    return params


# ----------------------------------------------------------------------------- forward
def _run_layer(x, layer, down_cfg, block_dil):
    d_stride, d_dil, d_pad = down_cfg
    x = conv_bn_lrelu(x, layer["down"], None,
                      stride=d_stride, dilation=d_dil, padding=d_pad)
    for blk in layer["blocks"]:
        y = conv_bn_lrelu(x, blk["conv1"], None, stride=1, dilation=1, padding=0)
        x = conv_bn_lrelu(y, blk["conv2"], x,
                          stride=1, dilation=block_dil, padding=block_dil)
    return x


def dilated_darknet_forward(params, x_nchw, dilate_scale=8):
    x = jnp.transpose(x_nchw, (0, 2, 3, 1)).astype(jnp.bfloat16)   # NCHW -> NHWC, bf16
    x = conv_bn_lrelu(x, params["conv1"], None, stride=1, dilation=1, padding=1)

    # per-layer (downsample stride, downsample dilation, downsample pad, block dilation)
    # reproducing _nostride_dilate: stride-2 3x3 -> stride 1 / dil=dilate//2;
    # other 3x3 -> dil=dilate.
    cfg = {li: (2, 1, 1, 1) for li in range(1, 6)}
    if dilate_scale == 8:
        cfg[4] = (1, 1, 1, 2)
        cfg[5] = (1, 2, 2, 4)
    elif dilate_scale == 16:
        cfg[5] = (1, 1, 1, 2)

    tuple_features = []
    for li in range(1, 6):
        ds, dd, dp, bd = cfg[li]
        x = _run_layer(x, params[f"layer{li}"], (ds, dd, dp), bd)
        tuple_features.append(jnp.transpose(x, (0, 3, 1, 2)).astype(jnp.float32))
    return tuple_features


# ----------------------------------------------------------------------------- reference (check)
def _ref_conv_bn_lrelu(x, p, stride, dilation, padding, residual=None):
    # Mirror the kernel's numerics: bf16 activations/weights, fp32 accumulate + epilogue,
    # bf16 activation output.
    y = jax.lax.conv_general_dilated(
        x.astype(jnp.bfloat16),
        jnp.transpose(p["w"], (2, 3, 1, 0)).astype(jnp.bfloat16),
        window_strides=(stride, stride),
        padding=[(padding, padding), (padding, padding)],
        rhs_dilation=(dilation, dilation),
        dimension_numbers=("NHWC", "HWIO", "NHWC"),
        preferred_element_type=jnp.float32)
    y = y * p["scale_raw"] + p["bias_raw"]
    y = jnp.where(y > 0, y, NEG_SLOPE * y)
    if residual is not None:
        y = y + residual.astype(jnp.float32)
    return y.astype(jnp.bfloat16)


if __name__ == "__main__":
    key = jax.random.PRNGKey(0)
    pkey, xkey = jax.random.split(key)
    params = init_params(pkey)

    # PyTorch-style NCHW input (RGB image, small spatial size)
    x = jax.random.normal(xkey, (2, 3, 16, 16), jnp.float32)

    feats = dilated_darknet_forward(params, x, dilate_scale=8)
    feats = jax.block_until_ready(feats)

    expected = [(2, 64, 8, 8), (2, 128, 4, 4), (2, 256, 2, 2), (2, 512, 2, 2), (2, 1024, 2, 2)]
    got = [tuple(f.shape) for f in feats]
    assert got == expected, (got, expected)

    # sanity-check the fused Pallas conv against a lax.conv reference (same bf16
    # activation precision) for stem + layer1 (downsample + residual block).
    xr = jnp.transpose(x, (0, 2, 3, 1)).astype(jnp.bfloat16)
    xr = _ref_conv_bn_lrelu(xr, params["conv1"], 1, 1, 1)
    l1 = params["layer1"]
    xr = _ref_conv_bn_lrelu(xr, l1["down"], 2, 1, 1)
    blk = l1["blocks"][0]
    yr = _ref_conv_bn_lrelu(xr, blk["conv1"], 1, 1, 0)
    xr = _ref_conv_bn_lrelu(yr, blk["conv2"], 1, 1, 1, residual=xr)
    ref_feat0 = jnp.transpose(xr, (0, 3, 1, 2)).astype(jnp.float32)
    assert bool(jnp.allclose(feats[0], ref_feat0, rtol=2.5e-2, atol=2.5e-2)), \
        "mismatch vs lax.conv reference"

    print("KERNEL_OK")
</pallas_src>

<mosaic_0001>
module attributes {stable_mosaic.version = 11 : i64} {
  func.func @_fused_kernel(%arg0: i32, %arg1: i32, %arg2: memref<256x128xbf16, #tpu.memory_space<vmem>>, %arg3: memref<128x128xbf16, #tpu.memory_space<vmem>>, %arg4: memref<1x128xf32, #tpu.memory_space<vmem>>, %arg5: memref<1x128xf32, #tpu.memory_space<vmem>>, %arg6: memref<256x128xbf16, #tpu.memory_space<vmem>>) attributes {dimension_semantics = [#tpu.dimension_semantics<parallel>, #tpu.dimension_semantics<parallel>], iteration_bounds = array<i64: 2, 1>, scalar_prefetch = 0 : i64, scratch_operands = 0 : i64, tpu.core_type = #tpu.core_type<tc>, window_params = [{transform_indices = @transform_0, window_bounds = array<i64: 256, 128>}, {transform_indices = @transform_1, window_bounds = array<i64: 128, 128>}, {transform_indices = @transform_2, window_bounds = array<i64: 1, 128>}, {transform_indices = @transform_3, window_bounds = array<i64: 1, 128>}, {transform_indices = @transform_4, window_bounds = array<i64: 256, 128>}]} {
    %c0 = arith.constant 0 : index
    %c0_0 = arith.constant 0 : index
    %0 = vector.load %arg2[%c0, %c0_0] : memref<256x128xbf16, #tpu.memory_space<vmem>>, vector<256x128xbf16>
    %c0_1 = arith.constant 0 : index
    %c0_2 = arith.constant 0 : index
    %1 = vector.load %arg3[%c0_1, %c0_2] : memref<128x128xbf16, #tpu.memory_space<vmem>>, vector<128x128xbf16>
    %cst = arith.constant dense<0.000000e+00> : vector<256x128xf32>
    %2 = tpu.matmul %0, %1, %cst {dimension_numbers = #tpu.dot_dimension_numbers<[1], [0], [0], [1], [0, 0, 1, 1], [], []>} : vector<256x128xbf16>, vector<128x128xbf16>, vector<256x128xf32> -> vector<256x128xf32>
    %c0_3 = arith.constant 0 : index
    %c0_4 = arith.constant 0 : index
    %3 = vector.load %arg4[%c0_3, %c0_4] : memref<1x128xf32, #tpu.memory_space<vmem>>, vector<1x128xf32>
    %4 = vector.broadcast %3 : vector<1x128xf32> to vector<256x128xf32>
    %5 = arith.mulf %2, %4 : vector<256x128xf32>
    %c0_5 = arith.constant 0 : index
    %c0_6 = arith.constant 0 : index
    %6 = vector.load %arg5[%c0_5, %c0_6] : memref<1x128xf32, #tpu.memory_space<vmem>>, vector<1x128xf32>
    %7 = vector.broadcast %6 : vector<1x128xf32> to vector<256x128xf32>
    %8 = arith.addf %5, %7 : vector<256x128xf32>
    %cst_7 = arith.constant 0.000000e+00 : f32
    %9 = vector.broadcast %cst_7 : f32 to vector<256x128xf32>
    %10 = arith.cmpf ogt, %8, %9 : vector<256x128xf32>
    %cst_8 = arith.constant 1.000000e-01 : f32
    %11 = vector.broadcast %cst_8 : f32 to vector<256x128xf32>
    %12 = arith.mulf %11, %8 : vector<256x128xf32>
    %13 = arith.select %10, %8, %12 : vector<256x128xi1>, vector<256x128xf32>
    %14 = arith.truncf %13 : vector<256x128xf32> to vector<256x128xbf16>
    %c0_9 = arith.constant 0 : index
    %c0_10 = arith.constant 0 : index
    %15 = vector.load %arg6[%c0_9, %c0_10] : memref<256x128xbf16, #tpu.memory_space<vmem>>, vector<256x128xbf16>
    tpu.vector_store %arg6[%c0_9, %c0_10], %14 {strides = array<i32>} : memref<256x128xbf16, #tpu.memory_space<vmem>>, vector<256x128xbf16>,
    return
  }
  func.func @transform_0(%arg0: i32, %arg1: i32) -> (i32, i32) {
    %c0_i32 = arith.constant 0 : i32
    %c0_i32_0 = arith.constant 0 : i32
    return %arg0, %c0_i32 : i32, i32
  }
  func.func @transform_1(%arg0: i32, %arg1: i32) -> (i32, i32) {
    %c0_i32 = arith.constant 0 : i32
    %c0_i32_0 = arith.constant 0 : i32
    return %c0_i32, %arg1 : i32, i32
  }
  func.func @transform_2(%arg0: i32, %arg1: i32) -> (i32, i32) {
    %c0_i32 = arith.constant 0 : i32
    %c0_i32_0 = arith.constant 0 : i32
    return %c0_i32, %arg1 : i32, i32
  }
  func.func @transform_3(%arg0: i32, %arg1: i32) -> (i32, i32) {
    %c0_i32 = arith.constant 0 : i32
    %c0_i32_0 = arith.constant 0 : i32
    return %c0_i32, %arg1 : i32, i32
  }
  func.func @transform_4(%arg0: i32, %arg1: i32) -> (i32, i32) {
    %c0_i32 = arith.constant 0 : i32
    return %arg0, %arg1 : i32, i32
  }
}

</mosaic_0001>

<bundles_post_ra>
// kernel: _conv_impl.1
= control target key start
LH: loop header
LB: loop body
LE: loop exit
PB: predicated region body
PF: predicated region fallthrough
CT: control target
= control target key end

     0   :  { %9 = vsyncpa [#allocation3], 0  ;;  %s1810_s0 = inlined_call_operand.vmem [shape: bf16[512,128], index: 0, kind: input, shape index: {}]   ;;  %s1811_s1 = inlined_call_operand.vmem [shape: bf16[128,128], index: 1, kind: input, shape index: {}]   ;;  %s1812_s2 = inlined_call_operand.vmem [shape: f32[1,128], index: 2, kind: input, shape index: {}]   ;;  %s1813_s3 = inlined_call_operand.vmem [shape: f32[1,128], index: 3, kind: input, shape index: {}]   ;;  %s1814_s4 = inlined_call_operand.hbm [shape: bf16[512,128], index: 4, kind: output, shape index: {}]  }
   0x1   :  { %11 = vsyncpa [#allocation3 + $0x1], 0  ;;  %s1551_s15 = smov 0   ;;  %s1553_s16 = smov 0  }
   0x2   :  { %s1555_s17 = smov 0   ;;  %s1557_s18 = smov 0  }
   0x3   :  { %s1559_s19 = smov 0   ;;  %s1561_s20 = smov 0  }
   0x4 LB: > { %s1072_s21 = sadd.s32 4294967295, %s1521_s20   ;;  %s1073_s22 = sadd.s32 4294967294, %s1521_s20   ;;  %s1521_s20 = sphi %s1561_s20, %s17_s20   ;;  %s1517_s19 = sphi %s1559_s19, %s1821_s19   ;;  %s1513_s18 = sphi %s1557_s18, %s1820_s18   ;;  %s1509_s17 = sphi %s1555_s17, %s1819_s17   ;;  %s1505_s16 = sphi %s1553_s16, %s1818_s16   ;;  %s1501_s15 = sphi %s1551_s15, %s1817_s15  }
   0x5   : > { %s29_s23 = sadd.s32 1, %s1517_s19  ;;  %s142_s24 = sadd.s32 1, %s1509_s17 }
   0x6   : > { %p31_p0 = scmp.ge.s32.totalorder %s29_s23, 2  ;;  %p152_p1 = scmp.ne.s32.totalorder %s1509_s17, %s1505_s16 }
   0x7   : > { %p153_p2 = scmp.eq.s32.totalorder %s1072_s21, 1  ;;  %p158_p3 = scmp.ne.s32.totalorder %s1505_s16, %s1501_s15 }
   0x8   : > { %s1823_s23 = smov (%p31_p0, %s29_s23), 0  ;;  %p159_p5 = scmp.eq.s32.totalorder %s1073_s22, 1 }
   0x9   : > { %p1591_p4 = por %p153_p2, %p152_p1  ;;  %s137_s26 = ssub.s32 %s1517_s19, %s1823_s23 }
   0xa   : > { %p1079_p6 = scmp.ge.s32.totalorder %s1521_s20, 1  ;;  %p140_p7 = scmp.eq.s32.totalorder %s137_s26, 0 }
   0xb   : > { %p1598_p8 = por %p159_p5, %p158_p3  ;;  %p205_p9 = scmp.lt.s32.totalorder %s1521_s20, 3 }
   0xc   : > { %s1604_s28 = scalar_select %p140_p7, %s1509_s17, %s142_s24  }
   0xd   : > { %p206_p10 = pnand %p1079_p6, %p205_p9 }
   0xe   : > { %v1419_v0 = vld [vmem:[%s1811_s1] sm:$0xff] (!%p206_p10)   ;;  %s1081_s5 = sshll.u32 (!%p206_p10), %s1513_s18, 5  ;;  %v1420_v1 = vld [vmem:[%s1811_s1 + $0x8] sm:$0xff] (!%p206_p10)   ;;  %v1421_v2 = vld [vmem:[%s1811_s1 + $0x10] sm:$0xff] (!%p206_p10)   ;;  %s238_s12 = sand.u32 (!%p206_p10), 1, %s1505_s16  }
   0xf   : > { %209 = sbr.rel (%p206_p10) target bundleno = 323 (0x143), region = 36  ;;  %p242_p11 = scmp.lt.s32.totalorder (!%p206_p10), %s1081_s5, 63  ;;  %1298 = vmatprep.subr.bf16.mxu0 (!%p206_p10), %v1419_v0  ;;  %1346 = vmatprep.subr.bf16.mxu1 (!%p206_p10), %v1419_v0  ;;  %v1422_v3 = vld [vmem:[%s1811_s1 + $0x18] sm:$0xff] (!%p206_p10)   ;;  %v1423_v6 = vld [vmem:[%s1811_s1 + $0x20] sm:$0xff] (!%p206_p10)   ;;  %v1424_v7 = vld [vmem:[%s1811_s1 + $0x28] sm:$0xff] (!%p206_p10)  }
  0x10   : > { %1299 = vmatpush3.bf16.msra.mxu0 (!%p206_p10), %v1419_v0  ;;  %1354 = vmatpush3.bf16.msra.mxu1 (!%p206_p10), %v1419_v0  ;;  %v1425_v8 = vld [vmem:[%s1811_s1 + $0x30] sm:$0xff] (!%p206_p10)   ;;  %v1426_v9 = vld [vmem:[%s1811_s1 + $0x38] sm:$0xff] (!%p206_p10)   ;;  %v1655_v24 = vld [vmem:[%s1812_s2] ss:$0 sm:$0xff] (!%p206_p10)  ;;  %s1178_s21 = sshll.u32 (!%p206_p10), %s1513_s18, 11  ;;  %s1764_s18 = scalar_lea.sflag (!%p206_p10), [#allocation3], %s238_s12 }
  0x11   : > { %1300 = vmatprep.subr.bf16.mxu0 (!%p206_p10), %v1420_v1  ;;  %1347 = vmatprep.subr.bf16.mxu1 (!%p206_p10), %v1420_v1  ;;  %v1660_v26 = vld [vmem:[%s1813_s3] ss:$0 sm:$0xff] (!%p206_p10)  ;;  %s1756_s29 = scalar_lea.hbm (!%p206_p10), %s1814_s4, %s1178_s21 }
  0x14   : > { %1301 = vmatpush3.bf16.msra.mxu0 (!%p206_p10), %v1420_v1  ;;  %1355 = vmatpush3.bf16.msra.mxu1 (!%p206_p10), %v1420_v1 }
  0x15   : > { %1302 = vmatprep.subr.bf16.mxu0 (!%p206_p10), %v1421_v2  ;;  %1348 = vmatprep.subr.bf16.mxu1 (!%p206_p10), %v1421_v2 }
  0x16   : > { %s1825_s5 = smov (!%p242_p11, %s1081_s5), 63 }
  0x17   : > { %s1082_s10 = sshll.u32 %s1825_s5, 2  ;;  %s1523_s5 = smov [#allocation2]  }
  0x18   : > { %s1619_s13 = scalar_lea.vmem %s1810_s0, %s1082_s10  ;;  %1303 = vmatpush3.bf16.msra.mxu0 %v1421_v2  ;;  %1356 = vmatpush3.bf16.msra.mxu1 %v1421_v2  ;;  %s1447_s6 = sshll.u32 %s1523_s5, 4  ;;  %s1448_s6 = int_to_ptr.vmem [resolvable:$false] %s1447_s6 }
  0x19   : > { %v1427_v4 = vld [vmem:[%s1619_s13] sm:$0xff]   ;;  %1304 = vmatprep.subr.bf16.mxu0 %v1422_v3  ;;  %1349 = vmatprep.subr.bf16.mxu1 %v1422_v3  ;;  %v1429_v10 = vld [vmem:[%s1619_s13 + $0x8] sm:$0xff]   ;;  %v1431_v12 = vld [vmem:[%s1619_s13 + $0x10] sm:$0xff]   ;;  %s1449_s7 = scalar_lea.vmem %s1448_s6, 4096 }
  0x1a   : > { %v1428_v5 = vld [vmem:[%s1619_s13 + $0x40] sm:$0xff]   ;;  %1314 = vmatprep.mubr.bf16.mxu0 %v1427_v4  ;;  %v1430_v11 = vld [vmem:[%s1619_s13 + $0x48] sm:$0xff]   ;;  %v1432_v13 = vld [vmem:[%s1619_s13 + $0x50] sm:$0xff]  }
  0x1b   : > { %1330 = vmatprep.mubr.bf16.mxu1 %v1428_v5  ;;  %v1433_v14 = vld [vmem:[%s1619_s13 + $0x18] sm:$0xff]   ;;  %v1435_v16 = vld [vmem:[%s1619_s13 + $0x20] sm:$0xff]   ;;  %v1437_v18 = vld [vmem:[%s1619_s13 + $0x28] sm:$0xff]  }
  0x1c   : > { %1305 = vmatpush3.bf16.msra.mxu0 %v1422_v3  ;;  %1357 = vmatpush3.bf16.msra.mxu1 %v1422_v3  ;;  %v1434_v15 = vld [vmem:[%s1619_s13 + $0x58] sm:$0xff]   ;;  %v1436_v17 = vld [vmem:[%s1619_s13 + $0x60] sm:$0xff]   ;;  %v1438_v19 = vld [vmem:[%s1619_s13 + $0x68] sm:$0xff]  }
  0x1d   : > { %1306 = vmatprep.subr.bf16.mxu0 %v1423_v6  ;;  %1350 = vmatprep.subr.bf16.mxu1 %v1423_v6  ;;  %v1439_v20 = vld [vmem:[%s1619_s13 + $0x30] sm:$0xff]   ;;  %v1441_v22 = vld [vmem:[%s1619_s13 + $0x38] sm:$0xff]  }
  0x1e   : > { %v1440_v21 = vld [vmem:[%s1619_s13 + $0x70] sm:$0xff]   ;;  %v1442_v23 = vld [vmem:[%s1619_s13 + $0x78] sm:$0xff]   ;;  %s1679_s13 = sshll.u32 %s238_s12, 7 }
  0x1f   : > { %s1688_s14 = scalar_lea.vmem [#allocation2], %s1679_s13 }
  0x20   : > { %1307 = vmatpush3.bf16.msra.mxu0 %v1423_v6  ;;  %1358 = vmatpush3.bf16.msra.mxu1 %v1423_v6  ;;  %s961_s22 = sshll.u32 %s1688_s14, 4  ;;  %s1758_s22 = int_to_ptr.vmem [resolvable:$true] %s961_s22 }
  0x21   : > { %1308 = vmatprep.subr.bf16.mxu0 %v1424_v7  ;;  %1351 = vmatprep.subr.bf16.mxu1 %v1424_v7  ;;  %s1443_s30 = scalar_lea.vmem %s1758_s22, 2048  ;;  %p1450_p1 = scmp.lt.s32.totalorder %s1758_s22, %s1448_s6 }
  0x22   : > { %p1444_p12 = scmp.ne.s32.totalorder %s1758_s22, %s1443_s30  ;;  %p1451_p2 = scmp.lt.s32.totalorder %s1449_s7, %s1443_s30 }
  0x24   : > { %1309 = vmatpush3.bf16.msra.mxu0 %v1424_v7  ;;  %1359 = vmatpush3.bf16.msra.mxu1 %v1424_v7  ;;  %p1445_p13 = pnand %p1444_p12, %p1591_p4  ;;  %p1452_p3 = por %p1451_p2, %p1450_p1 }
  0x25   : > { %1310 = vmatprep.subr.bf16.mxu0 %v1425_v8  ;;  %1352 = vmatprep.subr.bf16.mxu1 %v1425_v8 }
  0x26   : > { %p1446_p0 = pneg %p1445_p13 }
  0x28   : > { %1311 = vmatpush3.bf16.msra.mxu0 %v1425_v8  ;;  %1360 = vmatpush3.bf16.msra.mxu1 %v1425_v8  ;;  %p1453_p5 = pnand %p1452_p3, %p1446_p0 }
  0x29   : > { %1312 = vmatprep.subr.bf16.mxu0 %v1426_v9  ;;  %1353 = vmatprep.subr.bf16.mxu1 %v1426_v9 }
  0x2c   : > { %1313 = vmatpush3.bf16.msra.mxu0 %v1426_v9  ;;  %1361 = vmatpush3.bf16.msra.mxu1 %v1426_v9 }
  0x2f   : > { %1315 = vmatmul.mubr.bf16.vlgmr.msra.gmra.mrb[0].mxu0 %v1429_v10  ;;  %1331 = vmatmul.mubr.bf16.vlgmr.msra.gmra.mrb[0].mxu1 %v1430_v11 }
  0x30   : > { %1318 = vmatprep.mubr.bf16.mxu0 %v1431_v12  ;;  %1334 = vmatprep.mubr.bf16.mxu1 %v1432_v13 }
  0x37   : > { %1319 = vmatmul.mubr.bf16.gmra.mrb[4].mxu0 %v1433_v14  ;;  %1335 = vmatmul.mubr.bf16.gmra.mrb[4].mxu1 %v1434_v15 }
  0x38   : > { %1322 = vmatprep.mubr.bf16.mxu0 %v1435_v16  ;;  %1338 = vmatprep.mubr.bf16.mxu1 %v1436_v17 }
  0x3f   : > { %1323 = vmatmul.mubr.bf16.gmra.mrb[8].mxu0 %v1437_v18  ;;  %1339 = vmatmul.mubr.bf16.gmra.mrb[8].mxu1 %v1438_v19 }
  0x40   : > { %1326 = vmatprep.mubr.bf16.mxu0 %v1439_v20  ;;  %1342 = vmatprep.mubr.bf16.mxu1 %v1440_v21 }
  0x47   : > { %1327 = vmatmul.mubr.bf16.gmra.mrb[12].mxu0 %v1441_v22  ;;  %1343 = vmatmul.mubr.bf16.gmra.mrb[12].mxu1 %v1442_v23 }
 0x102   : > { %v1316_v25 = vpop.f32.mrb[0].mxu0  ;;  %v1332_v27 = vpop.f32.mrb[0].mxu1 }
 0x103   : > { %v621_v28 = vmul.f32 %v1316_v25, %v1655_v24  ;;  %v637_v29 = vmul.f32 %v1332_v27, %v1655_v24  ;;  %v485_v30 = vpop.f32.mrb[1].mxu0  ;;  %v549_v31 = vpop.f32.mrb[1].mxu1 }
 0x104   : > { %v619_v32 = vmul.f32 %v1655_v24, %v485_v30  ;;  %v635_v33 = vmul.f32 %v1655_v24, %v549_v31  ;;  %v1317_v34 = vpop.f32.mrb[2].mxu0  ;;  %v1333_v35 = vpop.f32.mrb[2].mxu1 }
 0x105   : > { %v660_v36 = vadd.f32 %v1660_v26, %v621_v28  ;;  %v676_v37 = vadd.f32 %v1660_v26, %v637_v29  ;;  %v622_v38 = vmul.f32 %v1317_v34, %v1655_v24  ;;  %v638_v39 = vmul.f32 %v1333_v35, %v1655_v24  ;;  %v488_v40 = vpop.f32.mrb[3].mxu0  ;;  %v552_v41 = vpop.f32.mrb[3].mxu1 }
 0x106   : > { %v658_v42 = vadd.f32 %v1660_v26, %v619_v32  ;;  %v674_v43 = vadd.f32 %v1660_v26, %v635_v33  ;;  %v620_v44 = vmul.f32 %v1655_v24, %v488_v40  ;;  %v636_v45 = vmul.f32 %v1655_v24, %v552_v41 }
 0x107   : > { %vm692_vm0 = vcmp.gt.f32.partialorder %v660_v36, 0.0  ;;  %v724_v46 = vmul.f32 0.1, %v660_v36  ;;  %vm708_vm1 = vcmp.gt.f32.partialorder %v676_v37, 0.0  ;;  %v740_v47 = vmul.f32 0.1, %v676_v37 }
 0x108   : > { %vm690_vm2 = vcmp.gt.f32.partialorder %v658_v42, 0.0  ;;  %v722_v48 = vmul.f32 0.1, %v658_v42  ;;  %vm706_vm3 = vcmp.gt.f32.partialorder %v674_v43, 0.0  ;;  %v738_v49 = vmul.f32 0.1, %v674_v43 }
 0x109   : > { %v756_v50 = vsel %vm692_vm0, %v660_v36, %v724_v46  ;;  %v772_v51 = vsel %vm708_vm1, %v676_v37, %v740_v47  ;;  %v661_v52 = vadd.f32 %v1660_v26, %v622_v38  ;;  %v677_v53 = vadd.f32 %v1660_v26, %v638_v39 }
 0x10a   : > { %v754_v54 = vsel %vm690_vm2, %v658_v42, %v722_v48  ;;  %v770_v55 = vsel %vm706_vm3, %v674_v43, %v738_v49  ;;  %v659_v56 = vadd.f32 %v1660_v26, %v620_v44  ;;  %v675_v57 = vadd.f32 %v1660_v26, %v636_v45  ;;  %v1320_v58 = vpop.f32.mrb[4].mxu0  ;;  %v1336_v59 = vpop.f32.mrb[4].mxu1 }
 0x10b   : > { %vm693_vm4 = vcmp.gt.f32.partialorder %v661_v52, 0.0  ;;  %v725_v60 = vmul.f32 0.1, %v661_v52  ;;  %vm709_vm5 = vcmp.gt.f32.partialorder %v677_v53, 0.0  ;;  %v741_v61 = vmul.f32 0.1, %v677_v53 }
 0x10c   : > { %vm691_vm6 = vcmp.gt.f32.partialorder %v659_v56, 0.0  ;;  %v723_v62 = vmul.f32 0.1, %v659_v56  ;;  %vm707_vm7 = vcmp.gt.f32.partialorder %v675_v57, 0.0  ;;  %v739_v63 = vmul.f32 0.1, %v675_v57 }
 0x10d   : > { %v757_v0 = vsel %vm693_vm4, %v661_v52, %v725_v60  ;;  %v773_v1 = vsel %vm709_vm5, %v677_v53, %v741_v61  ;;  %v625_v2 = vmul.f32 %v1320_v58, %v1655_v24  ;;  %v641_v3 = vmul.f32 %v1336_v59, %v1655_v24  ;;  %v501_v4 = vpop.f32.mrb[5].mxu0  ;;  %v565_v5 = vpop.f32.mrb[5].mxu1 }
 0x10e   : > { %v1187_v6 = vpack.c.bf16 %v757_v0, %v756_v50  ;;  %v1227_v7 = vpack.c.bf16 %v773_v1, %v772_v51  ;;  %v755_v8 = vsel %vm691_vm6, %v659_v56, %v723_v62  ;;  %v771_v9 = vsel %vm707_vm7, %v675_v57, %v739_v63  ;;  %v1321_v10 = vpop.f32.mrb[6].mxu0  ;;  %v1337_v11 = vpop.f32.mrb[6].mxu1 }
 0x10f   : > { %v1182_v12 = vpack.c.bf16 %v755_v8, %v754_v54  ;;  %v1222_v13 = vpack.c.bf16 %v771_v9, %v770_v55  ;;  %v664_v14 = vadd.f32 %v1660_v26, %v625_v2  ;;  %v680_v15 = vadd.f32 %v1660_v26, %v641_v3  ;;  %v504_v16 = vpop.f32.mrb[7].mxu0  ;;  %v568_v17 = vpop.f32.mrb[7].mxu1 }
 0x110   : > { %1259 = vst [vmem:[%s1688_s14 + $0x8] sm:$0xff] %v1187_v6   ;;  %1267 = vst [vmem:[%s1688_s14 + $0x48] sm:$0xff] %v1227_v7   ;;  %v623_v18 = vmul.f32 %v1655_v24, %v501_v4  ;;  %v639_v19 = vmul.f32 %v1655_v24, %v565_v5  ;;  %v626_v20 = vmul.f32 %v1321_v10, %v1655_v24 }
 0x111   : > { %v642_v21 = vmul.f32 %v1337_v11, %v1655_v24  ;;  %1183 = vst [vmem:[%s1688_s14] sm:$0xff] %v1182_v12   ;;  %1266 = vst [vmem:[%s1688_s14 + $0x40] sm:$0xff] %v1222_v13   ;;  %vm696_vm8 = vcmp.gt.f32.partialorder %v664_v14, 0.0  ;;  %v728_v22 = vmul.f32 0.1, %v664_v14  ;;  %vm712_vm9 = vcmp.gt.f32.partialorder %v680_v15, 0.0 }
 0x112   : > { %v744_v23 = vmul.f32 0.1, %v680_v15  ;;  %v662_v25 = vadd.f32 %v1660_v26, %v623_v18  ;;  %v678_v27 = vadd.f32 %v1660_v26, %v639_v19  ;;  %v665_v28 = vadd.f32 %v1660_v26, %v626_v20  ;;  %v1324_v30 = vpop.f32.mrb[8].mxu0  ;;  %v1340_v31 = vpop.f32.mrb[8].mxu1 }
 0x113   : > { %v681_v29 = vadd.f32 %v1660_v26, %v642_v21  ;;  %v760_v32 = vsel %vm696_vm8, %v664_v14, %v728_v22  ;;  %v624_v34 = vmul.f32 %v1655_v24, %v504_v16  ;;  %v640_v35 = vmul.f32 %v1655_v24, %v568_v17  ;;  %v517_v36 = vpop.f32.mrb[9].mxu0  ;;  %v581_v37 = vpop.f32.mrb[9].mxu1 }
 0x114   : > { %v776_v33 = vsel %vm712_vm9, %v680_v15, %v744_v23  ;;  %vm694_vm10 = vcmp.gt.f32.partialorder %v662_v25, 0.0  ;;  %v726_v38 = vmul.f32 0.1, %v662_v25  ;;  %vm710_vm11 = vcmp.gt.f32.partialorder %v678_v27, 0.0  ;;  %v1325_v46 = vpop.f32.mrb[10].mxu0  ;;  %v1341_v47 = vpop.f32.mrb[10].mxu1 }
 0x115   : > { %v742_v39 = vmul.f32 0.1, %v678_v27  ;;  %vm697_vm12 = vcmp.gt.f32.partialorder %v665_v28, 0.0  ;;  %v729_v40 = vmul.f32 0.1, %v665_v28  ;;  %vm713_vm13 = vcmp.gt.f32.partialorder %v681_v29, 0.0 }
 0x116   : > { %v745_v41 = vmul.f32 0.1, %v681_v29  ;;  %v758_v42 = vsel %vm694_vm10, %v662_v25, %v726_v38  ;;  %v663_v44 = vadd.f32 %v1660_v26, %v624_v34  ;;  %v679_v45 = vadd.f32 %v1660_v26, %v640_v35  ;;  %v520_v52 = vpop.f32.mrb[11].mxu0  ;;  %v584_v53 = vpop.f32.mrb[11].mxu1 }
 0x117   : > { %v774_v43 = vsel %vm710_vm11, %v678_v27, %v742_v39  ;;  %v761_v48 = vsel %vm697_vm12, %v665_v28, %v729_v40  ;;  %v629_v50 = vmul.f32 %v1324_v30, %v1655_v24  ;;  %v645_v51 = vmul.f32 %v1340_v31, %v1655_v24 }
 0x118   : > { %v777_v49 = vsel %vm713_vm13, %v681_v29, %v745_v41  ;;  %v1197_v54 = vpack.c.bf16 %v761_v48, %v760_v32  ;;  %vm695_vm14 = vcmp.gt.f32.partialorder %v663_v44, 0.0  ;;  %v727_v56 = vmul.f32 0.1, %v663_v44 }
 0x119   : > { %v1237_v55 = vpack.c.bf16 %v777_v49, %v776_v33  ;;  %vm711_vm15 = vcmp.gt.f32.partialorder %v679_v45, 0.0  ;;  %v743_v57 = vmul.f32 0.1, %v679_v45  ;;  %v668_v58 = vadd.f32 %v1660_v26, %v629_v50 }
 0x11a   : > { %v684_v59 = vadd.f32 %v1660_v26, %v645_v51  ;;  %1261 = vst [vmem:[%s1688_s14 + $0x18] sm:$0xff] %v1197_v54   ;;  %v759_v60 = vsel %vm695_vm14, %v663_v44, %v727_v56  ;;  %v627_v61 = vmul.f32 %v1655_v24, %v517_v36  ;;  %v643_v62 = vmul.f32 %v1655_v24, %v581_v37  ;;  %v1328_v0 = vpop.f32.mrb[12].mxu0  ;;  %v1344_v1 = vpop.f32.mrb[12].mxu1 }
 0x11b   : > { %1269 = vst [vmem:[%s1688_s14 + $0x58] sm:$0xff] %v1237_v55   ;;  %v630_v63 = vmul.f32 %v1325_v46, %v1655_v24  ;;  %v1192_v2 = vpack.c.bf16 %v759_v60, %v758_v42  ;;  %v775_v3 = vsel %vm711_vm15, %v679_v45, %v743_v57  ;;  %vm700_vm0 = vcmp.gt.f32.partialorder %v668_v58, 0.0  ;;  %v533_v5 = vpop.f32.mrb[13].mxu0  ;;  %v597_v6 = vpop.f32.mrb[13].mxu1 }
 0x11c   : > { %v732_v4 = vmul.f32 0.1, %v668_v58  ;;  %v1232_v7 = vpack.c.bf16 %v775_v3, %v774_v43  ;;  %vm716_vm1 = vcmp.gt.f32.partialorder %v684_v59, 0.0  ;;  %v748_v8 = vmul.f32 0.1, %v684_v59  ;;  %v1329_v10 = vpop.f32.mrb[14].mxu0 }
 0x11d   : > { %v666_v9 = vadd.f32 %v1660_v26, %v627_v61  ;;  %v1345_v11 = vpop.f32.mrb[14].mxu1  ;;  %1260 = vst [vmem:[%s1688_s14 + $0x10] sm:$0xff] %v1192_v2   ;;  %v682_v12 = vadd.f32 %v1660_v26, %v643_v62  ;;  %v669_v13 = vadd.f32 %v1660_v26, %v630_v63  ;;  %v646_v14 = vmul.f32 %v1341_v47, %v1655_v24  ;;  %v536_v15 = vpop.f32.mrb[15].mxu0 }
 0x11e   : > { %v600_v16 = vpop.f32.mrb[15].mxu1  ;;  %1268 = vst [vmem:[%s1688_s14 + $0x50] sm:$0xff] %v1232_v7   ;;  %v764_v17 = vsel %vm700_vm0, %v668_v58, %v732_v4  ;;  %v780_v18 = vsel %vm716_vm1, %v684_v59, %v748_v8  ;;  %v628_v19 = vmul.f32 %v1655_v24, %v520_v52  ;;  %v644_v25 = vmul.f32 %v1655_v24, %v584_v53 }
 0x11f   : > { %vm698_vm2 = vcmp.gt.f32.partialorder %v666_v9, 0.0  ;;  %v730_v20 = vmul.f32 0.1, %v666_v9  ;;  %vm701_vm3 = vcmp.gt.f32.partialorder %v669_v13, 0.0  ;;  %v733_v21 = vmul.f32 0.1, %v669_v13 }
 0x120   : > { %vm714_vm4 = vcmp.gt.f32.partialorder %v682_v12, 0.0  ;;  %v685_v22 = vadd.f32 %v1660_v26, %v646_v14  ;;  %v667_v23 = vadd.f32 %v1660_v26, %v628_v19  ;;  %v746_v27 = vmul.f32 0.1, %v682_v12 }
 0x121   : > { %v765_v28 = vsel %vm701_vm3, %v669_v13, %v733_v21  ;;  %v633_v29 = vmul.f32 %v1328_v0, %v1655_v24  ;;  %v649_v30 = vmul.f32 %v1344_v1, %v1655_v24  ;;  %v762_v33 = vsel %vm698_vm2, %v666_v9, %v730_v20 }
 0x122   : > { %v1207_v31 = vpack.c.bf16 %v765_v28, %v764_v17  ;;  %vm717_vm5 = vcmp.gt.f32.partialorder %v685_v22, 0.0  ;;  %v749_v32 = vmul.f32 0.1, %v685_v22  ;;  %vm699_vm6 = vcmp.gt.f32.partialorder %v667_v23, 0.0 }
 0x123   : > { %v731_v34 = vmul.f32 0.1, %v667_v23  ;;  %v683_v35 = vadd.f32 %v1660_v26, %v644_v25  ;;  %v672_v36 = vadd.f32 %v1660_v26, %v633_v29  ;;  %v688_v38 = vadd.f32 %v1660_v26, %v649_v30 }
 0x124   : > { %1263 = vst [vmem:[%s1688_s14 + $0x28] sm:$0xff] %v1207_v31   ;;  %v781_v37 = vsel %vm717_vm5, %v685_v22, %v749_v32  ;;  %v631_v39 = vmul.f32 %v1655_v24, %v533_v5  ;;  %v634_v40 = vmul.f32 %v1329_v10, %v1655_v24  ;;  %v647_v45 = vmul.f32 %v1655_v24, %v597_v6 }
 0x125   : > { %v1247_v41 = vpack.c.bf16 %v781_v37, %v780_v18  ;;  %v763_v42 = vsel %vm699_vm6, %v667_v23, %v731_v34  ;;  %vm715_vm7 = vcmp.gt.f32.partialorder %v683_v35, 0.0  ;;  %v747_v43 = vmul.f32 0.1, %v683_v35 }
 0x126   : > { %v1202_v44 = vpack.c.bf16 %v763_v42, %v762_v33  ;;  %v778_v46 = vsel %vm714_vm4, %v682_v12, %v746_v27  ;;  %vm704_vm8 = vcmp.gt.f32.partialorder %v672_v36, 0.0  ;;  %v736_v48 = vmul.f32 0.1, %v672_v36 }
 0x127   : > { %1271 = vst [vmem:[%s1688_s14 + $0x68] sm:$0xff] %v1247_v41   ;;  %v779_v47 = vsel %vm715_vm7, %v683_v35, %v747_v43  ;;  %v752_v50 = vmul.f32 0.1, %v688_v38  ;;  %v673_v51 = vadd.f32 %v1660_v26, %v634_v40  ;;  %v650_v52 = vmul.f32 %v1345_v11, %v1655_v24 }
 0x128   : > { %1262 = vst [vmem:[%s1688_s14 + $0x20] sm:$0xff] %v1202_v44   ;;  %v1242_v49 = vpack.c.bf16 %v779_v47, %v778_v46  ;;  %vm720_vm9 = vcmp.gt.f32.partialorder %v688_v38, 0.0  ;;  %v670_v53 = vadd.f32 %v1660_v26, %v631_v39  ;;  %v686_v54 = vadd.f32 %v1660_v26, %v647_v45 }
 0x129   : > { %vm705_vm10 = vcmp.gt.f32.partialorder %v673_v51, 0.0  ;;  %v737_v55 = vmul.f32 0.1, %v673_v51  ;;  %v689_v56 = vadd.f32 %v1660_v26, %v650_v52  ;;  %v768_v57 = vsel %vm704_vm8, %v672_v36, %v736_v48 }
 0x12a   : > { %1270 = vst [vmem:[%s1688_s14 + $0x60] sm:$0xff] %v1242_v49   ;;  %v632_v58 = vmul.f32 %v1655_v24, %v536_v15  ;;  %v648_v59 = vmul.f32 %v1655_v24, %v600_v16  ;;  %v784_v60 = vsel %vm720_vm9, %v688_v38, %v752_v50  ;;  %v734_v63 = vmul.f32 0.1, %v670_v53 }
 0x12b   : > { %v769_v61 = vsel %vm705_vm10, %v673_v51, %v737_v55  ;;  %vm721_vm11 = vcmp.gt.f32.partialorder %v689_v56, 0.0  ;;  %v753_v62 = vmul.f32 0.1, %v689_v56  ;;  %vm702_vm12 = vcmp.gt.f32.partialorder %v670_v53, 0.0 }
 0x12c   : > { %v1217_v0 = vpack.c.bf16 %v769_v61, %v768_v57  ;;  %v671_v1 = vadd.f32 %v1660_v26, %v632_v58  ;;  %v687_v2 = vadd.f32 %v1660_v26, %v648_v59  ;;  %vm718_vm13 = vcmp.gt.f32.partialorder %v686_v54, 0.0 }
 0x12d   : > { %v750_v3 = vmul.f32 0.1, %v686_v54  ;;  %v785_v4 = vsel %vm721_vm11, %v689_v56, %v753_v62  ;;  %v766_v7 = vsel %vm702_vm12, %v670_v53, %v734_v63 }
 0x12e   : > { %1265 = vst [vmem:[%s1688_s14 + $0x38] sm:$0xff] %v1217_v0   ;;  %v1257_v5 = vpack.c.bf16 %v785_v4, %v784_v60  ;;  %vm703_vm14 = vcmp.gt.f32.partialorder %v671_v1, 0.0  ;;  %v735_v24 = vmul.f32 0.1, %v671_v1  ;;  %vm719_vm15 = vcmp.gt.f32.partialorder %v687_v2, 0.0 }
 0x12f   : > { %v751_v6 = vmul.f32 0.1, %v687_v2  ;;  %v782_v26 = vsel %vm718_vm13, %v686_v54, %v750_v3 }
 0x130   : > { %1273 = vst [vmem:[%s1688_s14 + $0x78] sm:$0xff] %v1257_v5   ;;  %v767_v8 = vsel %vm703_vm14, %v671_v1, %v735_v24 }
 0x131   : > { %v1212_v9 = vpack.c.bf16 %v767_v8, %v766_v7  ;;  %v783_v10 = vsel %vm719_vm15, %v687_v2, %v751_v6 }
 0x132   : > { %v1252_v11 = vpack.c.bf16 %v783_v10, %v782_v26 }
 0x133   : > { %1264 = vst [vmem:[%s1688_s14 + $0x30] sm:$0xff] %v1212_v9  }
 0x134   : > { %1272 = vst [vmem:[%s1688_s14 + $0x70] sm:$0xff] %v1252_v11  }
 0x135   : > { %1456 = shalt.err (!%p1453_p5)
}
 0x136   : > { %s1457_s8 = scalar_lea.hbm %s1756_s29, 2048  ;;  %s1461_s11 = scalar_lea.hbm %s1814_s4, 4096 }
 0x137   : > { %p1458_p6 = scmp.ne.s32.totalorder %s1756_s29, %s1457_s8  ;;  %p1462_p10 = scmp.lt.u32.totalorder %s1756_s29, %s1814_s4 }
 0x138   : > { %p1463_p11 = scmp.lt.u32.totalorder %s1461_s11, %s1457_s8  ;;  %p1465_p13 = scmp.lt.u32.totalorder %s1457_s8, %s1756_s29 }
 0x139   : > { %p1459_p7 = pnand %p1458_p6, %p1591_p4 }
 0x13a   : > { %p1464_p12 = por %p1463_p11, %p1462_p10 }
 0x13b   : > { %p1460_p9 = pneg %p1459_p7 }
 0x13c   : > { %p1466_p0 = por %p1465_p13, %p1464_p12 }
 0x13e   : > { %p1467_p1 = pnand %p1466_p0, %p1460_p9 }
 0x140   : > { %1470 = shalt.err (!%p1467_p1)
}
 0x141   : > { %s1524_s14 = smov 64   ;;  %s1525_s21 = smov 4  }
 0x142   : > { %1362 = dma.vmem_to_hbm [thread:$0]  (%p1591_p4), %s1758_s22, 2048, %s1756_s29, %s1764_s18, %s1524_s14, %s1524_s14, %s1525_s21  }
 0x143 PF: > { %p1368_p2 = scmp.ge.s32.totalorder %s1521_s20, 2  ;;  %s976_s24 = sand.u32 1, %s1501_s15  }
 0x144   : > { %s977_s26 = scalar_lea.sflag [#allocation3], %s976_s24 }
 0x145   : > { %p1365_p3 = pnand %p1368_p2, %p1598_p8 }
 0x147   : > { %1496 = dma.done.wait (!%p1365_p3), %s977_s26, 2048  }
 0x148   : > { %1498 = vsyncadd (!%p1365_p3), %s977_s26, 4294965248  ;;  %s17_s20 = sadd.s32 1, %s1521_s20   ;;  %s1817_s15 = smov %s1505_s16 }
 0x149   : > { %p14_p5 = scmp.ge.s32.totalorder %s17_s20, 4   ;;  %s1818_s16 = smov %s1509_s17 }
 0x14a   : > { %s1819_s17 = smov %s1604_s28  ;;  %s1820_s18 = smov %s1517_s19 }
 0x14b   : > { %s1821_s19 = smov %s1823_s23  ;;  %16 = sbr.rel (!%p14_p5) target bundleno = 4 (0x4), region = 80 }
 0x152   :  { %982 = vsyncpa [#allocation3], 1 }
 0x153   :  { %984 = vsyncpa [#allocation3 + $0x1], 1 }

</bundles_post_ra>
